<compile_context>
chip_gen: v5e
topology: v5e:2x2
jax: 0.10.0
libtpu: 0.0.40
codegen_flags: <defaults>
</compile_context>

<pallas_src>
import numpy as np
import jax
import jax.numpy as jnp
from jax.experimental import pallas as pl
from jax.experimental.pallas import tpu as pltpu

# ----------------------------- config (small, synthetic) --------------------
B = 2            # batch
SENT_LIMIT = 16  # seq_length; must equal config.sent_limit (nn.Linear(sent_limit, sent_limit))
EMB = 32         # total_emb_dim
H = 32           # config.gcn_hidden_size (== config.d_model)
NL = 2           # config.gcn_num_layers
N_HIGHWAY = 2    # Highway(2, H)
PAD = 0
NEG_INF = -1e30
GCN_DIRECTED = False


# ----------------------------- Pallas kernel --------------------------------
def clue_predictor_kernel(x_ref, adjT_ref, mask_ref,
                          wc_ref, hw_ref, hb_ref,
                          gw_ref, gb_ref,
                          cw_ref, cb_ref,
                          lw_ref, lb_ref,
                          o_ref):
    n_high = hw_ref.shape[0]
    n_gcn = gw_ref.shape[0]
    hsz = gw_ref.shape[1]

    x = x_ref[...]          # (EMB, B*L)   channels-first, batch folded into lanes
    adjT = adjT_ref[...]    # (B*L, B*L)   block-diagonal adjacency, transposed
    maskS = mask_ref[...]   # (1, B*L)

    # --- Initialized_Conv1d(total_emb_dim, H, bias=False)  (pointwise) ------
    h = jnp.dot(wc_ref[...], x, preferred_element_type=jnp.float32)       # (H, B*L)

    # --- Highway(2, H): gate + linear weights fused into one matmul/layer ---
    for i in range(n_high):
        z = jnp.dot(hw_ref[i], h, preferred_element_type=jnp.float32) + hb_ref[i]  # (2H, B*L)
        g = jax.nn.sigmoid(z[:hsz, :])
        h = g * z[hsz:, :] + (1.0 - g) * h                                 # (H, B*L)

    # --- GCN(H, H, NL): fused  W_l(Ax)+W_l(h) = W_l @ (Ax+h) + 2*b_l --------
    # (bias appears twice because W_l is applied to both terms in the ref)
    inv_denom = 1.0 / (jnp.sum(adjT, axis=0, keepdims=True) + 1.0)         # (1, B*L), hoisted
    gcn_outs = []
    for l in range(n_gcn):
        Ax = jnp.dot(h, adjT, preferred_element_type=jnp.float32)          # (H, B*L)
        pre = (jnp.dot(gw_ref[l], Ax + h, preferred_element_type=jnp.float32)
               + 2.0 * gb_ref[l])
        h = jax.nn.relu(pre * inv_denom)                                    # (H, B*L)
        gcn_outs.append(h)

    # --- Initialized_Conv1d(NL*H, 1, relu=True): one fused matmul -----------
    cat = jnp.concatenate(gcn_outs, axis=0)                                 # (NL*H, B*L)
    conv_row = jax.nn.relu(
        jnp.dot(cw_ref[...], cat, preferred_element_type=jnp.float32)
        + cb_ref[...])                                                      # (1, B*L)

    # --- nn.Linear(sent_limit, sent_limit) over the seq axis, all batches at
    #     once via the block-diagonal W^T: a single lane-dense MXU contraction
    y = jnp.dot(conv_row, lw_ref[...], preferred_element_type=jnp.float32) + lb_ref[...]  # (1, B*L)

    # --- mask: y * maskS + (1 - maskS) * -1e30 -------------------------------
    o_ref[...] = y * maskS + (1.0 - maskS) * NEG_INF


# ----------------------------- wrapper ---------------------------------------
def clue_predictor_forward(Semb, adj, maskS, params):
    """Semb: (B, EMB, L) torch NCW; adj: (B, L, L); maskS: (B, L).  Returns (B, L) logits."""
    (wc, hg_w, hg_b, hl_w, hl_b, gw, gb, cw, cb, lw, lb) = params
    Bsz, E, L = Semb.shape
    BL = Bsz * L

    # ---- host-side layout prep (free glue; no change to kernel semantics) ---
    x_T = jnp.transpose(Semb, (1, 0, 2)).reshape(E, BL)          # (EMB, B*L)
    # block-diagonal adjacency (transposed) so adj@h is one batched matmul
    adj_bdT = jnp.zeros((BL, BL), jnp.float32)
    for b in range(Bsz):
        adj_bdT = adj_bdT.at[b * L:(b + 1) * L, b * L:(b + 1) * L].set(adj[b].T)
    maskS_flat = maskS.reshape(1, BL)
    # fused Highway weights: gate rows then linear rows -> one (2H, H) matmul/layer
    hw_cat = jnp.concatenate([hg_w, hl_w], axis=1)               # (Nhw, 2H, H)
    hb_cat = jnp.concatenate([hg_b, hl_b], axis=1)               # (Nhw, 2H, 1)
    # block-diagonal final Linear weight (W^T blocks): y_row = conv_row @ lw_big + lb
    lw_big = jnp.kron(jnp.eye(Bsz, dtype=lw.dtype), lw.T)        # (B*L, B*L)
    lb_flat = jnp.tile(lb, (1, Bsz))                             # (1, B*L)

    args = (x_T, adj_bdT, maskS_flat,
            wc, hw_cat, hb_cat, gw, gb, cw, cb, lw_big, lb_flat)
    in_specs = [pl.BlockSpec(a.shape, lambda i, nd=a.ndim: (0,) * nd) for a in args]

    out = pl.pallas_call(
        clue_predictor_kernel,
        out_shape=jax.ShapeDtypeStruct((1, BL), jnp.float32),
        grid=(1,),   # single fused step: per-grid-step overhead dominates at this size
        in_specs=in_specs,
        out_specs=pl.BlockSpec((1, BL), lambda i: (0, 0)),
        compiler_params=pltpu.CompilerParams(dimension_semantics=("arbitrary",)),
    )(*args)
    return out.reshape(Bsz, L)


# ----------------------------- main ------------------------------------------
if __name__ == "__main__":
    key = jax.random.PRNGKey(0)
    keys = jax.random.split(key, 10)
    std = 0.02

    # Parameters in torch-native channels-first application layout:
    #   conv / highway weights (Cout, Cin); GCN Linear weight W (applied as W @ x_col);
    #   lw is the torch nn.Linear(L, L) weight; lb its bias.
    wc = std * jax.random.normal(keys[0], (H, EMB), jnp.float32)             # conv1d, no bias
    hg_w = std * jax.random.normal(keys[1], (N_HIGHWAY, H, H), jnp.float32)  # Highway gates
    hg_b = jnp.zeros((N_HIGHWAY, H, 1), jnp.float32)
    hl_w = std * jax.random.normal(keys[2], (N_HIGHWAY, H, H), jnp.float32)  # Highway linears
    hl_b = jnp.zeros((N_HIGHWAY, H, 1), jnp.float32)
    gw = std * jax.random.normal(keys[3], (NL, H, H), jnp.float32)           # GCN W_l
    gb = jnp.zeros((NL, H, 1), jnp.float32)
    cw = std * jax.random.normal(keys[4], (1, NL * H), jnp.float32)          # conv (NL*H -> 1)
    cb = jnp.zeros((1, 1), jnp.float32)
    lw = std * jax.random.normal(keys[5], (SENT_LIMIT, SENT_LIMIT), jnp.float32)  # linear W
    lb = std * jax.random.normal(keys[6], (1, SENT_LIMIT), jnp.float32)
    params = (wc, hg_w, hg_b, hl_w, hl_b, gw, gb, cw, cb, lw, lb)

    # Inputs: Semb is NCW like torch; kernel consumes the batch-folded transpose.
    Semb = jax.random.normal(keys[7], (B, EMB, SENT_LIMIT), jnp.float32)     # (B, C, L)

    # batch['ans_sent_word_ids'] with PAD(=0) tail  ->  maskS (glue, elementwise)
    valid_lens = np.array([12, 9])
    word_ids = np.zeros((B, SENT_LIMIT), dtype=np.int32)
    for i, vl in enumerate(valid_lens):
        word_ids[i, :vl] = np.arange(1, vl + 1)
    maskS = (jnp.asarray(word_ids) != PAD).astype(jnp.float32)               # (B, L)

    # batch['ans_sent_syntactic_edges'] -> adjacency (host-side scatter glue,
    # variable-length edge lists; gcn_directed=False -> symmetric)
    edges = [
        [(0, 1), (1, 2), (2, 3), (3, 4), (4, 5), (2, 6), (6, 7)],
        [(0, 1), (1, 2), (2, 3), (1, 4), (4, 5)],
    ]
    adj_np = np.zeros((B, SENT_LIMIT, SENT_LIMIT), dtype=np.float32)
    for i, es in enumerate(edges):
        for s, t in es:
            adj_np[i, s, t] = 1.0
            if not GCN_DIRECTED:
                adj_np[i, t, s] = 1.0
    adj = jnp.asarray(adj_np)

    # batch['y1_in_sent'] / batch['y2_in_sent'] -> maskA (glue; note: Aemb in the
    # torch code is computed but never returned, so it is omitted here).
    # TODO(synk): Aemb answer-span gather is dead code in the reference forward.
    start = jnp.array([2, 1], jnp.int32)
    end = jnp.array([5, 3], jnp.int32)
    ans_len = end - start + 1
    max_ans_len = int(jax.device_get(jnp.max(ans_len)))
    maskA = (jnp.arange(max_ans_len)[None, :] < ans_len[:, None]).astype(jnp.float32)

    y_clue_logits = clue_predictor_forward(Semb, adj, maskS, params)         # (B, L)
    jax.block_until_ready((y_clue_logits, maskA))
    assert y_clue_logits.shape == (B, SENT_LIMIT)
    assert maskA.shape == (B, max_ans_len)
    print("KERNEL_OK")
</pallas_src>

<mosaic_0001>
module attributes {stable_mosaic.version = 11 : i64} {
  func.func @clue_predictor_kernel(%arg0: i32, %arg1: memref<32x32xf32, #tpu.memory_space<vmem>>, %arg2: memref<32x32xf32, #tpu.memory_space<vmem>>, %arg3: memref<1x32xf32, #tpu.memory_space<vmem>>, %arg4: memref<32x32xf32, #tpu.memory_space<vmem>>, %arg5: memref<2x64x32xf32, #tpu.memory_space<vmem>>, %arg6: memref<2x64x1xf32, #tpu.memory_space<vmem>>, %arg7: memref<2x32x32xf32, #tpu.memory_space<vmem>>, %arg8: memref<2x32x1xf32, #tpu.memory_space<vmem>>, %arg9: memref<1x64xf32, #tpu.memory_space<vmem>>, %arg10: memref<1x1xf32, #tpu.memory_space<vmem>>, %arg11: memref<32x32xf32, #tpu.memory_space<vmem>>, %arg12: memref<1x32xf32, #tpu.memory_space<vmem>>, %arg13: memref<1x32xf32, #tpu.memory_space<vmem>>) attributes {dimension_semantics = [#tpu.dimension_semantics<arbitrary>], iteration_bounds = array<i64: 1>, scalar_prefetch = 0 : i64, scratch_operands = 0 : i64, tpu.core_type = #tpu.core_type<tc>, window_params = [{pipeline_mode = #tpu.pipeline_mode<synchronous>, transform_indices = @transform_0, window_bounds = array<i64: 32, 32>}, {pipeline_mode = #tpu.pipeline_mode<synchronous>, transform_indices = @transform_1, window_bounds = array<i64: 32, 32>}, {pipeline_mode = #tpu.pipeline_mode<synchronous>, transform_indices = @transform_2, window_bounds = array<i64: 1, 32>}, {pipeline_mode = #tpu.pipeline_mode<synchronous>, transform_indices = @transform_3, window_bounds = array<i64: 32, 32>}, {pipeline_mode = #tpu.pipeline_mode<synchronous>, transform_indices = @transform_4, window_bounds = array<i64: 2, 64, 32>}, {pipeline_mode = #tpu.pipeline_mode<synchronous>, transform_indices = @transform_5, window_bounds = array<i64: 2, 64, 1>}, {pipeline_mode = #tpu.pipeline_mode<synchronous>, transform_indices = @transform_6, window_bounds = array<i64: 2, 32, 32>}, {pipeline_mode = #tpu.pipeline_mode<synchronous>, transform_indices = @transform_7, window_bounds = array<i64: 2, 32, 1>}, {pipeline_mode = #tpu.pipeline_mode<synchronous>, transform_indices = @transform_8, window_bounds = array<i64: 1, 64>}, {pipeline_mode = #tpu.pipeline_mode<synchronous>, transform_indices = @transform_9, window_bounds = array<i64: 1, 1>}, {pipeline_mode = #tpu.pipeline_mode<synchronous>, transform_indices = @transform_10, window_bounds = array<i64: 32, 32>}, {pipeline_mode = #tpu.pipeline_mode<synchronous>, transform_indices = @transform_11, window_bounds = array<i64: 1, 32>}, {pipeline_mode = #tpu.pipeline_mode<synchronous>, transform_indices = @transform_12, window_bounds = array<i64: 1, 32>}]} {
    %c0 = arith.constant 0 : index
    %c0_0 = arith.constant 0 : index
    %0 = vector.load %arg1[%c0, %c0_0] : memref<32x32xf32, #tpu.memory_space<vmem>>, vector<32x32xf32>
    %c0_1 = arith.constant 0 : index
    %c0_2 = arith.constant 0 : index
    %1 = vector.load %arg2[%c0_1, %c0_2] : memref<32x32xf32, #tpu.memory_space<vmem>>, vector<32x32xf32>
    %c0_3 = arith.constant 0 : index
    %c0_4 = arith.constant 0 : index
    %2 = vector.load %arg3[%c0_3, %c0_4] : memref<1x32xf32, #tpu.memory_space<vmem>>, vector<1x32xf32>
    %c0_5 = arith.constant 0 : index
    %c0_6 = arith.constant 0 : index
    %3 = vector.load %arg4[%c0_5, %c0_6] : memref<32x32xf32, #tpu.memory_space<vmem>>, vector<32x32xf32>
    %cst = arith.constant dense<0.000000e+00> : vector<32x32xf32>
    %4 = tpu.matmul %3, %0, %cst {dimension_numbers = #tpu.dot_dimension_numbers<[1], [0], [0], [1], [0, 0, 1, 1], [], []>} : vector<32x32xf32>, vector<32x32xf32>, vector<32x32xf32> -> vector<32x32xf32>
    %c0_7 = arith.constant 0 : index
    %c0_8 = arith.constant 0 : index
    %c0_9 = arith.constant 0 : index
    %5 = vector.load %arg5[%c0_7, %c0_8, %c0_9] : memref<2x64x32xf32, #tpu.memory_space<vmem>>, vector<1x64x32xf32>
    %6 = vector.shape_cast %5 : vector<1x64x32xf32> to vector<64x32xf32>
    %cst_10 = arith.constant dense<0.000000e+00> : vector<64x32xf32>
    %7 = tpu.matmul %6, %4, %cst_10 {dimension_numbers = #tpu.dot_dimension_numbers<[1], [0], [0], [1], [0, 0, 1, 1], [], []>} : vector<64x32xf32>, vector<32x32xf32>, vector<64x32xf32> -> vector<64x32xf32>
    %c0_11 = arith.constant 0 : index
    %c0_12 = arith.constant 0 : index
    %c0_13 = arith.constant 0 : index
    %8 = vector.load %arg6[%c0_11, %c0_12, %c0_13] : memref<2x64x1xf32, #tpu.memory_space<vmem>>, vector<1x64x1xf32>
    %9 = vector.shape_cast %8 : vector<1x64x1xf32> to vector<64x1xf32>
    %10 = vector.broadcast %9 : vector<64x1xf32> to vector<64x32xf32>
    %11 = arith.addf %7, %10 : vector<64x32xf32>
    %12 = vector.extract_strided_slice %11 {offsets = [0, 0], sizes = [32, 32], strides = [1, 1]} : vector<64x32xf32> to vector<32x32xf32>
    %13 = arith.negf %12 : vector<32x32xf32>
    %14 = math.exp %13 : vector<32x32xf32>
    %cst_14 = arith.constant 1.000000e+00 : f32
    %15 = vector.broadcast %cst_14 : f32 to vector<32x32xf32>
    %16 = arith.addf %15, %14 : vector<32x32xf32>
    %17 = arith.divf %15, %16 : vector<32x32xf32>
    %18 = vector.extract_strided_slice %11 {offsets = [32, 0], sizes = [32, 32], strides = [1, 1]} : vector<64x32xf32> to vector<32x32xf32>
    %19 = arith.mulf %17, %18 : vector<32x32xf32>
    %cst_15 = arith.constant 1.000000e+00 : f32
    %20 = vector.broadcast %cst_15 : f32 to vector<32x32xf32>
    %21 = arith.subf %20, %17 : vector<32x32xf32>
    %22 = arith.mulf %21, %4 : vector<32x32xf32>
    %23 = arith.addf %19, %22 : vector<32x32xf32>
    %c1 = arith.constant 1 : index
    %c0_16 = arith.constant 0 : index
    %c0_17 = arith.constant 0 : index
    %24 = vector.load %arg5[%c1, %c0_16, %c0_17] : memref<2x64x32xf32, #tpu.memory_space<vmem>>, vector<1x64x32xf32>
    %25 = vector.shape_cast %24 : vector<1x64x32xf32> to vector<64x32xf32>
    %cst_18 = arith.constant dense<0.000000e+00> : vector<64x32xf32>
    %26 = tpu.matmul %25, %23, %cst_18 {dimension_numbers = #tpu.dot_dimension_numbers<[1], [0], [0], [1], [0, 0, 1, 1], [], []>} : vector<64x32xf32>, vector<32x32xf32>, vector<64x32xf32> -> vector<64x32xf32>
    %c1_19 = arith.constant 1 : index
    %c0_20 = arith.constant 0 : index
    %c0_21 = arith.constant 0 : index
    %27 = vector.load %arg6[%c1_19, %c0_20, %c0_21] : memref<2x64x1xf32, #tpu.memory_space<vmem>>, vector<1x64x1xf32>
    %28 = vector.shape_cast %27 : vector<1x64x1xf32> to vector<64x1xf32>
    %29 = vector.broadcast %28 : vector<64x1xf32> to vector<64x32xf32>
    %30 = arith.addf %26, %29 : vector<64x32xf32>
    %31 = vector.extract_strided_slice %30 {offsets = [0, 0], sizes = [32, 32], strides = [1, 1]} : vector<64x32xf32> to vector<32x32xf32>
    %32 = arith.negf %31 : vector<32x32xf32>
    %33 = math.exp %32 : vector<32x32xf32>
    %cst_22 = arith.constant 1.000000e+00 : f32
    %34 = vector.broadcast %cst_22 : f32 to vector<32x32xf32>
    %35 = arith.addf %34, %33 : vector<32x32xf32>
    %36 = arith.divf %34, %35 : vector<32x32xf32>
    %37 = vector.extract_strided_slice %30 {offsets = [32, 0], sizes = [32, 32], strides = [1, 1]} : vector<64x32xf32> to vector<32x32xf32>
    %38 = arith.mulf %36, %37 : vector<32x32xf32>
    %cst_23 = arith.constant 1.000000e+00 : f32
    %39 = vector.broadcast %cst_23 : f32 to vector<32x32xf32>
    %40 = arith.subf %39, %36 : vector<32x32xf32>
    %41 = arith.mulf %40, %23 : vector<32x32xf32>
    %42 = arith.addf %38, %41 : vector<32x32xf32>
    %cst_24 = arith.constant dense<0.000000e+00> : vector<32xf32>
    %43 = vector.multi_reduction <add>, %1, %cst_24 [0] : vector<32x32xf32> to vector<32xf32>
    %44 = vector.shape_cast %43 : vector<32xf32> to vector<1x32xf32>
    %cst_25 = arith.constant 1.000000e+00 : f32
    %45 = vector.broadcast %cst_25 : f32 to vector<1x32xf32>
    %46 = arith.addf %44, %45 : vector<1x32xf32>
    %cst_26 = arith.constant 1.000000e+00 : f32
    %47 = vector.broadcast %cst_26 : f32 to vector<1x32xf32>
    %48 = arith.divf %47, %46 : vector<1x32xf32>
    %cst_27 = arith.constant dense<0.000000e+00> : vector<32x32xf32>
    %49 = tpu.matmul %42, %1, %cst_27 {dimension_numbers = #tpu.dot_dimension_numbers<[1], [0], [0], [1], [0, 0, 1, 1], [], []>} : vector<32x32xf32>, vector<32x32xf32>, vector<32x32xf32> -> vector<32x32xf32>
    %c0_28 = arith.constant 0 : index
    %c0_29 = arith.constant 0 : index
    %c0_30 = arith.constant 0 : index
    %50 = vector.load %arg7[%c0_28, %c0_29, %c0_30] : memref<2x32x32xf32, #tpu.memory_space<vmem>>, vector<1x32x32xf32>
    %51 = vector.shape_cast %50 : vector<1x32x32xf32> to vector<32x32xf32>
    %52 = arith.addf %49, %42 : vector<32x32xf32>
    %cst_31 = arith.constant dense<0.000000e+00> : vector<32x32xf32>
    %53 = tpu.matmul %51, %52, %cst_31 {dimension_numbers = #tpu.dot_dimension_numbers<[1], [0], [0], [1], [0, 0, 1, 1], [], []>} : vector<32x32xf32>, vector<32x32xf32>, vector<32x32xf32> -> vector<32x32xf32>
    %c0_32 = arith.constant 0 : index
    %c0_33 = arith.constant 0 : index
    %c0_34 = arith.constant 0 : index
    %54 = vector.load %arg8[%c0_32, %c0_33, %c0_34] : memref<2x32x1xf32, #tpu.memory_space<vmem>>, vector<1x32x1xf32>
    %55 = vector.shape_cast %54 : vector<1x32x1xf32> to vector<32x1xf32>
    %cst_35 = arith.constant 2.000000e+00 : f32
    %56 = vector.broadcast %cst_35 : f32 to vector<32x1xf32>
    %57 = arith.mulf %56, %55 : vector<32x1xf32>
    %58 = vector.broadcast %57 : vector<32x1xf32> to vector<32x32xf32>
    %59 = arith.addf %53, %58 : vector<32x32xf32>
    %60 = vector.broadcast %48 : vector<1x32xf32> to vector<32x32xf32>
    %61 = arith.mulf %59, %60 : vector<32x32xf32>
    %cst_36 = arith.constant 0.000000e+00 : f32
    %62 = vector.broadcast %cst_36 : f32 to vector<32x32xf32>
    %63 = arith.maximumf %61, %62 : vector<32x32xf32>
    %cst_37 = arith.constant dense<0.000000e+00> : vector<32x32xf32>
    %64 = tpu.matmul %63, %1, %cst_37 {dimension_numbers = #tpu.dot_dimension_numbers<[1], [0], [0], [1], [0, 0, 1, 1], [], []>} : vector<32x32xf32>, vector<32x32xf32>, vector<32x32xf32> -> vector<32x32xf32>
    %c1_38 = arith.constant 1 : index
    %c0_39 = arith.constant 0 : index
    %c0_40 = arith.constant 0 : index
    %65 = vector.load %arg7[%c1_38, %c0_39, %c0_40] : memref<2x32x32xf32, #tpu.memory_space<vmem>>, vector<1x32x32xf32>
    %66 = vector.shape_cast %65 : vector<1x32x32xf32> to vector<32x32xf32>
    %67 = arith.addf %64, %63 : vector<32x32xf32>
    %cst_41 = arith.constant dense<0.000000e+00> : vector<32x32xf32>
    %68 = tpu.matmul %66, %67, %cst_41 {dimension_numbers = #tpu.dot_dimension_numbers<[1], [0], [0], [1], [0, 0, 1, 1], [], []>} : vector<32x32xf32>, vector<32x32xf32>, vector<32x32xf32> -> vector<32x32xf32>
    %c1_42 = arith.constant 1 : index
    %c0_43 = arith.constant 0 : index
    %c0_44 = arith.constant 0 : index
    %69 = vector.load %arg8[%c1_42, %c0_43, %c0_44] : memref<2x32x1xf32, #tpu.memory_space<vmem>>, vector<1x32x1xf32>
    %70 = vector.shape_cast %69 : vector<1x32x1xf32> to vector<32x1xf32>
    %cst_45 = arith.constant 2.000000e+00 : f32
    %71 = vector.broadcast %cst_45 : f32 to vector<32x1xf32>
    %72 = arith.mulf %71, %70 : vector<32x1xf32>
    %73 = vector.broadcast %72 : vector<32x1xf32> to vector<32x32xf32>
    %74 = arith.addf %68, %73 : vector<32x32xf32>
    %75 = vector.broadcast %48 : vector<1x32xf32> to vector<32x32xf32>
    %76 = arith.mulf %74, %75 : vector<32x32xf32>
    %cst_46 = arith.constant 0.000000e+00 : f32
    %77 = vector.broadcast %cst_46 : f32 to vector<32x32xf32>
    %78 = arith.maximumf %76, %77 : vector<32x32xf32>
    %79 = tpu.concatenate %63, %78 in 0 : vector<32x32xf32>, vector<32x32xf32> -> vector<64x32xf32>
    %c0_47 = arith.constant 0 : index
    %c0_48 = arith.constant 0 : index
    %80 = vector.load %arg9[%c0_47, %c0_48] : memref<1x64xf32, #tpu.memory_space<vmem>>, vector<1x64xf32>
    %cst_49 = arith.constant dense<0.000000e+00> : vector<1x32xf32>
    %81 = tpu.matmul %80, %79, %cst_49 {dimension_numbers = #tpu.dot_dimension_numbers<[1], [0], [0], [1], [0, 0, 1, 1], [], []>} : vector<1x64xf32>, vector<64x32xf32>, vector<1x32xf32> -> vector<1x32xf32>
    %c0_50 = arith.constant 0 : index
    %c0_51 = arith.constant 0 : index
    %82 = vector.load %arg10[%c0_50, %c0_51] : memref<1x1xf32, #tpu.memory_space<vmem>>, vector<1x1xf32>
    %83 = vector.broadcast %82 : vector<1x1xf32> to vector<1x32xf32>
    %84 = arith.addf %81, %83 : vector<1x32xf32>
    %cst_52 = arith.constant 0.000000e+00 : f32
    %85 = vector.broadcast %cst_52 : f32 to vector<1x32xf32>
    %86 = arith.maximumf %84, %85 : vector<1x32xf32>
    %c0_53 = arith.constant 0 : index
    %c0_54 = arith.constant 0 : index
    %87 = vector.load %arg11[%c0_53, %c0_54] : memref<32x32xf32, #tpu.memory_space<vmem>>, vector<32x32xf32>
    %cst_55 = arith.constant dense<0.000000e+00> : vector<1x32xf32>
    %88 = tpu.matmul %86, %87, %cst_55 {dimension_numbers = #tpu.dot_dimension_numbers<[1], [0], [0], [1], [0, 0, 1, 1], [], []>} : vector<1x32xf32>, vector<32x32xf32>, vector<1x32xf32> -> vector<1x32xf32>
    %c0_56 = arith.constant 0 : index
    %c0_57 = arith.constant 0 : index
    %89 = vector.load %arg12[%c0_56, %c0_57] : memref<1x32xf32, #tpu.memory_space<vmem>>, vector<1x32xf32>
    %90 = arith.addf %88, %89 : vector<1x32xf32>
    %91 = arith.mulf %90, %2 : vector<1x32xf32>
    %cst_58 = arith.constant 1.000000e+00 : f32
    %92 = vector.broadcast %cst_58 : f32 to vector<1x32xf32>
    %93 = arith.subf %92, %2 : vector<1x32xf32>
    %cst_59 = arith.constant -1.000000e+30 : f32
    %94 = vector.broadcast %cst_59 : f32 to vector<1x32xf32>
    %95 = arith.mulf %93, %94 : vector<1x32xf32>
    %96 = arith.addf %91, %95 : vector<1x32xf32>
    %c0_60 = arith.constant 0 : index
    %c0_61 = arith.constant 0 : index
    %97 = vector.load %arg13[%c0_60, %c0_61] : memref<1x32xf32, #tpu.memory_space<vmem>>, vector<1x32xf32>
    tpu.vector_store %arg13[%c0_60, %c0_61], %96 {strides = array<i32>} : memref<1x32xf32, #tpu.memory_space<vmem>>, vector<1x32xf32>,
    return
  }
  func.func @transform_0(%arg0: i32) -> (i32, i32) {
    %c0_i32 = arith.constant 0 : i32
    %c0_i32_0 = arith.constant 0 : i32
    %c0_i32_1 = arith.constant 0 : i32
    return %c0_i32, %c0_i32_0 : i32, i32
  }
  func.func @transform_1(%arg0: i32) -> (i32, i32) {
    %c0_i32 = arith.constant 0 : i32
    %c0_i32_0 = arith.constant 0 : i32
    %c0_i32_1 = arith.constant 0 : i32
    return %c0_i32, %c0_i32_0 : i32, i32
  }
  func.func @transform_2(%arg0: i32) -> (i32, i32) {
    %c0_i32 = arith.constant 0 : i32
    %c0_i32_0 = arith.constant 0 : i32
    %c0_i32_1 = arith.constant 0 : i32
    return %c0_i32, %c0_i32_0 : i32, i32
  }
  func.func @transform_3(%arg0: i32) -> (i32, i32) {
    %c0_i32 = arith.constant 0 : i32
    %c0_i32_0 = arith.constant 0 : i32
    %c0_i32_1 = arith.constant 0 : i32
    return %c0_i32, %c0_i32_0 : i32, i32
  }
  func.func @transform_4(%arg0: i32) -> (i32, i32, i32) {
    %c0_i32 = arith.constant 0 : i32
    %c0_i32_0 = arith.constant 0 : i32
    %c0_i32_1 = arith.constant 0 : i32
    %c0_i32_2 = arith.constant 0 : i32
    return %c0_i32, %c0_i32_0, %c0_i32_1 : i32, i32, i32
  }
  func.func @transform_5(%arg0: i32) -> (i32, i32, i32) {
    %c0_i32 = arith.constant 0 : i32
    %c0_i32_0 = arith.constant 0 : i32
    %c0_i32_1 = arith.constant 0 : i32
    %c0_i32_2 = arith.constant 0 : i32
    return %c0_i32, %c0_i32_0, %c0_i32_1 : i32, i32, i32
  }
  func.func @transform_6(%arg0: i32) -> (i32, i32, i32) {
    %c0_i32 = arith.constant 0 : i32
    %c0_i32_0 = arith.constant 0 : i32
    %c0_i32_1 = arith.constant 0 : i32
    %c0_i32_2 = arith.constant 0 : i32
    return %c0_i32, %c0_i32_0, %c0_i32_1 : i32, i32, i32
  }
  func.func @transform_7(%arg0: i32) -> (i32, i32, i32) {
    %c0_i32 = arith.constant 0 : i32
    %c0_i32_0 = arith.constant 0 : i32
    %c0_i32_1 = arith.constant 0 : i32
    %c0_i32_2 = arith.constant 0 : i32
    return %c0_i32, %c0_i32_0, %c0_i32_1 : i32, i32, i32
  }
  func.func @transform_8(%arg0: i32) -> (i32, i32) {
    %c0_i32 = arith.constant 0 : i32
    %c0_i32_0 = arith.constant 0 : i32
    %c0_i32_1 = arith.constant 0 : i32
    return %c0_i32, %c0_i32_0 : i32, i32
  }
  func.func @transform_9(%arg0: i32) -> (i32, i32) {
    %c0_i32 = arith.constant 0 : i32
    %c0_i32_0 = arith.constant 0 : i32
    %c0_i32_1 = arith.constant 0 : i32
    return %c0_i32, %c0_i32_0 : i32, i32
  }
  func.func @transform_10(%arg0: i32) -> (i32, i32) {
    %c0_i32 = arith.constant 0 : i32
    %c0_i32_0 = arith.constant 0 : i32
    %c0_i32_1 = arith.constant 0 : i32
    return %c0_i32, %c0_i32_0 : i32, i32
  }
  func.func @transform_11(%arg0: i32) -> (i32, i32) {
    %c0_i32 = arith.constant 0 : i32
    %c0_i32_0 = arith.constant 0 : i32
    %c0_i32_1 = arith.constant 0 : i32
    return %c0_i32, %c0_i32_0 : i32, i32
  }
  func.func @transform_12(%arg0: i32) -> (i32, i32) {
    %c0_i32 = arith.constant 0 : i32
    %c0_i32_0 = arith.constant 0 : i32
    %c0_i32_1 = arith.constant 0 : i32
    return %c0_i32, %c0_i32_0 : i32, i32
  }
}

</mosaic_0001>

<bundles_post_ra>
// kernel: tpu_custom_call.1
= control target key start
LH: loop header
LB: loop body
LE: loop exit
PB: predicated region body
PF: predicated region fallthrough
CT: control target
= control target key end

     0   :  { %s1451_s0 = inlined_call_operand.vmem [shape: f32[32,32], index: 0, kind: input, shape index: {}]   ;;  %s1452_s1 = inlined_call_operand.vmem [shape: f32[32,32], index: 1, kind: input, shape index: {}]   ;;  %s1453_s2 = inlined_call_operand.vmem [shape: f32[1,32], index: 2, kind: input, shape index: {}]   ;;  %s1454_s3 = inlined_call_operand.vmem [shape: f32[32,32], index: 3, kind: input, shape index: {}]   ;;  %s1455_s4 = inlined_call_operand.vmem [shape: f32[2,64,32], index: 4, kind: input, shape index: {}]   ;;  %s1456_s5 = inlined_call_operand.vmem [shape: f32[2,64,1], index: 5, kind: input, shape index: {}]   ;;  %s1457_s6 = inlined_call_operand.vmem [shape: f32[2,32,32], index: 6, kind: input, shape index: {}]   ;;  %s1458_s7 = inlined_call_operand.vmem [shape: f32[2,32,1], index: 7, kind: input, shape index: {}]   ;;  %s1459_s8 = inlined_call_operand.vmem [shape: f32[1,64], index: 8, kind: input, shape index: {}]   ;;  %s1460_s9 = inlined_call_operand.<no memory space> [shape: f32[1,1], index: 9, kind: input, shape index: {}]   ;;  %s1461_s10 = inlined_call_operand.vmem [shape: f32[32,32], index: 10, kind: input, shape index: {}]   ;;  %s1462_s11 = inlined_call_operand.vmem [shape: f32[1,32], index: 11, kind: input, shape index: {}]   ;;  %s1463_s12 = inlined_call_operand.hbm [shape: f32[1,32], index: 12, kind: output, shape index: {}]  }
   0x1   :  { %v17_v0 = vstv %s1460_s9 }
   0x2   :  { %18 = vst [vmem:[#allocation2] sm:$0x1] %v17_v0 }
   0x3   :  { %v47_v1 = vld [vmem:[%s1451_s0 + $0x18] sm:$0xff]  ;;  %v46_v2 = vld [vmem:[%s1451_s0 + $0x10] sm:$0xff]  ;;  %v45_v3 = vld [vmem:[%s1451_s0 + $0x8] sm:$0xff]  ;;  %v1024_v4 = vmov 0  }
   0x4   :  { %955 = vmatpush.msra.mxu3 %v47_v1  ;;  %82 = vmatpush.msra.mxu0 %v47_v1  ;;  %v110_v5 = vld [vmem:[%s1456_s5 + $0x18] sm:$0xff]  ;;  %v108_v6 = vld [vmem:[%s1456_s5 + $0x8] sm:$0xff]  ;;  %v44_v7 = vld [vmem:[%s1451_s0] sm:$0xff] }
   0x5   :  { %961 = vset.pattern.permute.xlu0 %v1024_v4  ;;  %962 = vset.pattern.permute.xlu1 %v1024_v4 }
   0x6   :  { %956 = vmatpush.msra.mxu3 %v46_v2  ;;  %83 = vmatpush.msra.mxu0 %v46_v2 }
   0x7   :  { %132 = vperm.xlu0 %961, %v110_v5   ;;  %122 = vperm.xlu1 %962, %v108_v6  }
   0x8   :  { %19 = vsyncpa [#allocation4], 0  ;;  %957 = vmatpush.msra.mxu3 %v45_v3  ;;  %v55_v8 = vld [vmem:[%s1454_s3 + $0x10] sm:$0xff]  ;;  %vm57_vm0 = vcmask 261120   ;;  %84 = vmatpush.msra.mxu0 %v45_v3  ;;  %v53_v9 = vld [vmem:[%s1454_s3] sm:$0xff]  ;;  %s876_s23 = sshll.u32 %s1463_s12, 4  ;;  %s877_s23 = int_to_ptr.hbm [resolvable:$true] %s876_s23 }
   0x9   :  { %963 = vset.pattern.permute.xlu2 %v1024_v4  ;;  %v109_v10 = vld [vmem:[%s1456_s5 + $0x10] sm:$0xff]  ;;  %v56_v11 = vld [vmem:[%s1454_s3 + $0x18] sm:$0xff]  ;;  %v54_v12 = vld [vmem:[%s1454_s3 + $0x8] sm:$0xff] }
   0xa   :  { %958 = vmatpush.msra.mxu3 %v44_v7  ;;  %85 = vmatpush.msra.mxu0 %v44_v7  ;;  %v112_v13 = vld [vmem:[%s1456_s5 + $0x28] sm:$0xff]  ;;  %v107_v14 = vld [vmem:[%s1456_s5] sm:$0xff]  ;;  %v911_v18 = vld [vmem:[%s1456_s5 + $0x50] sm:$0xff] }
   0xb   :  { %887 = vmatmul.msk.f32.vlgmr.msra.gmra.mxu3 %vm57_vm0, %v55_v8  ;;  %885 = vmatmul.msk.f32.vlgmr.msra.gmra.mxu0 %vm57_vm0, %v53_v9  ;;  %v910_v15 = vld [vmem:[%s1456_s5 + $0x48] sm:$0xff]  ;;  %v111_v16 = vld [vmem:[%s1456_s5 + $0x20] sm:$0xff]  ;;  %v916_v19 = vld [vmem:[%s1456_s5 + $0x78] sm:$0xff] }
   0xc   :  { %v913_v17 = vld [vmem:[%s1456_s5 + $0x60] sm:$0xff]  ;;  %v914_v20 = vld [vmem:[%s1456_s5 + $0x68] sm:$0xff]  ;;  %v603_v21 = vld [vmem:[%s1458_s7 + $0x10] sm:$0xff] }
   0xd   :  { %v607_v22 = vmul.f32 2.0, %v603_v21  ;;  %v601_v25 = vld [vmem:[%s1458_s7] sm:$0xff]  ;;  %v947_v26 = vld [vmem:[%s1458_s7 + $0x30] sm:$0xff]  ;;  %v604_v30 = vld [vmem:[%s1458_s7 + $0x18] sm:$0xff] }
   0xe   :  { %v605_v27 = vmul.f32 2.0, %v601_v25  ;;  %v731_v28 = vmul.f32 2.0, %v947_v26  ;;  %v114_v31 = vld [vmem:[%s1456_s5 + $0x38] sm:$0xff]  ;;  %v608_v32 = vmul.f32 2.0, %v604_v30  ;;  %v803_v34 = vld [vmem:[#allocation2] sm:$0x1] }
   0xf   :  { %127 = vperm.xlu0 %961, %v109_v10   ;;  %117 = vperm.xlu1 %962, %v107_v14   ;;  %v99_v35 = vld [vmem:[%s1455_s4] sm:$0xff]  ;;  %v946_v36 = vld [vmem:[%s1458_s7 + $0x28] sm:$0xff]  ;;  %v113_v37 = vld [vmem:[%s1456_s5 + $0x30] sm:$0xff] }
  0x10   :  { %152 = vperm.xlu2 %963, %v114_v31   ;;  %v730_v38 = vmul.f32 2.0, %v946_v36  ;;  %v100_v39 = vld [vmem:[%s1455_s4 + $0x8] sm:$0xff]  ;;  %v909_v40 = vld [vmem:[%s1456_s5 + $0x40] sm:$0xff]  ;;  %v101_v41 = vld [vmem:[%s1455_s4 + $0x10] sm:$0xff] }
  0x11   :  { %v912_v42 = vld [vmem:[%s1456_s5 + $0x58] sm:$0xff]  ;;  %v915_v44 = vld [vmem:[%s1456_s5 + $0x70] sm:$0xff]  ;;  %v602_v45 = vld [vmem:[%s1458_s7 + $0x8] sm:$0xff] }
  0x12   :  { %v102_v43 = vld [vmem:[%s1455_s4 + $0x18] sm:$0xff]  ;;  %v103_v46 = vld [vmem:[%s1455_s4 + $0x20] sm:$0xff]  ;;  %v606_v47 = vmul.f32 2.0, %v602_v45  ;;  %v104_v49 = vld [vmem:[%s1455_s4 + $0x28] sm:$0xff] }
  0x13   :  { %888 = vmatmul.msk.f32.gmra.mxu3 %vm57_vm0, %v56_v11  ;;  %886 = vmatmul.msk.f32.gmra.mxu0 %vm57_vm0, %v54_v12  ;;  %v948_v48 = vld [vmem:[%s1458_s7 + $0x38] sm:$0xff]  ;;  %v945_v51 = vld [vmem:[%s1458_s7 + $0x20] sm:$0xff]  ;;  %v105_v52 = vld [vmem:[%s1455_s4 + $0x30] sm:$0xff] }
  0x14   :  { %v732_v50 = vmul.f32 2.0, %v948_v48  ;;  %v729_v53 = vmul.f32 2.0, %v945_v51  ;;  %v106_v54 = vld [vmem:[%s1455_s4 + $0x38] sm:$0xff] }
  0x17   :  { %142 = vperm.xlu0 %961, %v112_v13   ;;  %137 = vperm.xlu1 %962, %v111_v16  }
  0x18   :  { %147 = vperm.xlu2 %963, %v113_v37  }
  0x1f   :  { %337 = vperm.xlu0 %961, %v910_v15   ;;  %342 = vperm.xlu1 %962, %v911_v18  }
  0x20   :  { %332 = vperm.xlu2 %963, %v909_v40  }
  0x27   :  { %352 = vperm.xlu0 %961, %v913_v17   ;;  %357 = vperm.xlu1 %962, %v914_v20  }
  0x28   :  { %347 = vperm.xlu2 %963, %v912_v42  }
  0x2f   :  { %367 = vperm.xlu0 %961, %v916_v19   ;;  %611 = vperm.xlu1 %962, %v605_v27  }
  0x30   :  { %362 = vperm.xlu2 %963, %v915_v44  }
  0x37   :  { %621 = vperm.xlu0 %961, %v607_v22   ;;  %626 = vperm.xlu1 %962, %v608_v32  }
  0x38   :  { %616 = vperm.xlu2 %963, %v606_v47  }
  0x3f   :  { %745 = vperm.xlu0 %961, %v731_v28   ;;  %740 = vperm.xlu1 %962, %v730_v38  }
  0x40   :  { %750 = vperm.xlu2 %963, %v732_v50  }
  0x47   :  { %806 = vperm.xlu0 %961, %v803_v34  }
  0x48   :  { %735 = vperm.xlu2 %963, %v729_v53  }
  0x6a   :  { %v153_v31 = vpop.permute.xlu2 %152 }
  0x79   :  { %v123_v55 = vpop.permute.xlu1 %122  ;;  %v133_v58 = vpop.permute.xlu0 %132 }
  0x81   :  { %v118_v57 = vpop.permute.xlu1 %117  ;;  %v128_v0 = vpop.permute.xlu0 %127 }
  0x88   :  { %v1160_v24 = vpop.f32.mrf.mxu0 }
  0x8e   :  { %v1158_v23 = vpop.f32.mrf.mxu3 }
  0x90   :  { %v1177_v33 = vpop.f32.mrf.mxu0 }
  0x96   :  { %v1168_v29 = vpop.f32.mrf.mxu3 }
  0x97   :  { %191 = vmatpush.msra.mxu1 %v1168_v29 }
  0x99   :  { %192 = vmatpush.msra.mxu1 %v1158_v23 }
  0x9b   :  { %193 = vmatpush.msra.mxu1 %v1177_v33 }
  0x9d   :  { %194 = vmatpush.msra.mxu1 %v1160_v24 }
  0x9e   :  { %889 = vmatmul.msk.f32.vlgmr.msra.gmra.mxu1 %vm57_vm0, %v99_v35 }
  0xa6   :  { %890 = vmatmul.msk.f32.gmra.mxu1 %vm57_vm0, %v100_v39 }
  0xae   :  { %891 = vmatmul.msk.f32.gmra.mxu1 %vm57_vm0, %v101_v41 }
  0xb6   :  { %892 = vmatmul.msk.f32.gmra.mxu1 %vm57_vm0, %v102_v43 }
  0xbe   :  { %893 = vmatmul.msk.f32.gmra.mxu1 %vm57_vm0, %v103_v46 }
  0xc6   :  { %894 = vmatmul.msk.f32.gmra.mxu1 %vm57_vm0, %v104_v49 }
  0xce   :  { %895 = vmatmul.msk.f32.gmra.mxu1 %vm57_vm0, %v105_v52 }
  0xd6   :  { %896 = vmatmul.msk.f32.gmra.mxu1 %vm57_vm0, %v106_v54 }
 0x11b   :  { %v196_v56 = vpop.f32.mrf.mxu1 }
 0x11c   :  { %v197_v59 = vadd.f32 %v196_v56, %v118_v57 }
 0x11e   :  { %v897_v62 = vmul.f32 -1.442695, %v197_v59 }
 0x120   :  { %964 = vpow2.f32 %v897_v62 }
 0x123   :  { %v199_v60 = vpop.f32.mrf.mxu1 }
 0x124   :  { %v200_v61 = vadd.f32 %v199_v60, %v123_v55 }
 0x126   :  { %v898_v63 = vmul.f32 -1.442695, %v200_v61  ;;  %v965_v4 = vpop.eup %964 }
 0x127   :  { %v1238_v6 = vadd.f32 1.0, %v965_v4 }
 0x128   :  { %966 = vpow2.f32 %v898_v63 }
 0x129   :  { %vm241_vm1 = vweird.f32 %v1238_v6  ;;  %v245_v52 = vand.u32 2147483647, %v1238_v6  ;;  %v247_v53 = vand.u32 2147483648, %v1238_v6 }
 0x12b   :  { %v202_v1 = vpop.f32.mrf.mxu1 }
 0x12c   :  { %v203_v2 = vadd.f32 %v202_v1, %v128_v0 }
 0x12e   :  { %v899_v3 = vmul.f32 -1.442695, %v203_v2  ;;  %v967_v5 = vpop.eup %966  ;;  %v143_v2 = vpop.permute.xlu0 %142 }
 0x12f   :  { %v1240_v7 = vadd.f32 1.0, %v967_v5 }
 0x130   :  { %968 = vpow2.f32 %v899_v3  ;;  %v248_v3 = vor.u32 1.1754944e-38, %v247_v53 }
 0x131   :  { %970 = vrcp.f32 %v1238_v6  ;;  %vm256_vm7 = vweird.f32 %v1240_v7  ;;  %v260_v45 = vand.u32 2147483647, %v1240_v7  ;;  %v262_v46 = vand.u32 2147483648, %v1240_v7 }
 0x132   :  { %972 = vrcp.f32 %v1240_v7 }
 0x133   :  { %v205_v8 = vpop.f32.mrf.mxu1  ;;  %v263_v60 = vor.u32 1.1754944e-38, %v262_v46  ;;  %vm261_vm15 = vcmp.eq.f32.partialorder %v260_v45, 8.507059e+37 }
 0x134   :  { %v206_v9 = vadd.f32 %v205_v8, %v133_v58  ;;  %v148_v58 = vpop.permute.xlu2 %147 }
 0x136   :  { %v969_v10 = vpop.eup %968  ;;  %v900_v11 = vmul.f32 -1.442695, %v206_v9  ;;  %v338_v45 = vpop.permute.xlu0 %337 }
 0x137   :  { %v234_v12 = vadd.f32 1.0, %v969_v10  ;;  %v1246_v14 = vpop.eup %970 }
 0x138   :  { %974 = vpow2.f32 %v900_v11  ;;  %v1248_v15 = vpop.eup %972  ;;  %v237_v21 = vmul.f32 %v1246_v14, %v1238_v6  ;;  %vm242_vm6 = vweird.f32 %v1246_v14 }
 0x139   :  { %976 = vrcp.f32 %v234_v12  ;;  %v252_v19 = vmul.f32 %v1248_v15, %v1240_v7  ;;  %vm257_vm2 = vweird.f32 %v1248_v15  ;;  %vm271_vm4 = vweird.f32 %v234_v12  ;;  %vm1287_vm14 = vmor %vm241_vm1, %vm242_vm6  ;;  %v138_v7 = vpop.permute.xlu1 %137 }
 0x13a   :  { %v238_v27 = vsub.f32 1.0, %v237_v21  ;;  %v275_v39 = vand.u32 2147483647, %v234_v12  ;;  %v277_v40 = vand.u32 2147483648, %v234_v12  ;;  %vm1271_vm9 = vmor %vm256_vm7, %vm257_vm2  ;;  %vm246_vm2 = vcmp.eq.f32.partialorder %v245_v52, 8.507059e+37 }
 0x13b   :  { %v1244_v13 = vpop.f32.mrf.mxu1  ;;  %v253_v26 = vsub.f32 1.0, %v252_v19 }
 0x13c   :  { %v239_v35 = vmul.f32 %v1246_v14, %v238_v27  ;;  %v278_v54 = vor.u32 1.1754944e-38, %v277_v40  ;;  %vm276_vm12 = vcmp.eq.f32.partialorder %v275_v39, 8.507059e+37  ;;  %v209_v10 = vadd.f32 %v1244_v13, %v138_v7  ;;  %v904_v27 = vld [vmem:[%s1455_s4 + $0x58] sm:$0xff]  ;;  %v49_v40 = vld [vmem:[%s1452_s1 + $0x8] sm:$0xff] }
 0x13d   :  { %v254_v32 = vmul.f32 %v1248_v15, %v253_v26 }
 0x13e   :  { %v975_v16 = vpop.eup %974  ;;  %v240_v48 = vadd.f32 %v1246_v14, %v239_v35 }
 0x13f   :  { %v977_v17 = vpop.eup %976  ;;  %v235_v18 = vadd.f32 1.0, %v975_v16  ;;  %v255_v42 = vadd.f32 %v1248_v15, %v254_v32  ;;  %v908_v32 = vld [vmem:[%s1455_s4 + $0x78] sm:$0xff] }
 0x140   :  { %v267_v20 = vmul.f32 %v977_v17, %v234_v12  ;;  %vm272_vm3 = vweird.f32 %v977_v17  ;;  %v244_v63 = vsel %vm1287_vm14, %v1246_v14, %v240_v48 }
 0x141   :  { %978 = vrcp.f32 %v235_v18  ;;  %v292_v41 = vand.u32 2147483648, %v235_v18  ;;  %v290_v44 = vand.u32 2147483647, %v235_v18  ;;  %vm1264_vm8 = vmor %vm271_vm4, %vm272_vm3  ;;  %vm286_vm10 = vweird.f32 %v235_v18 }
 0x142   :  { %v268_v22 = vsub.f32 1.0, %v267_v20  ;;  %v259_v56 = vsel %vm1271_vm9, %v1248_v15, %v255_v42  ;;  %v249_v11 = vsel %vm246_vm2, %v248_v3, %v244_v63  ;;  %v48_v42 = vld [vmem:[%s1452_s1] sm:$0xff] }
 0x143   :  { %v211_v25 = vpop.f32.mrf.mxu1  ;;  %v293_v55 = vor.u32 1.1754944e-38, %v292_v41  ;;  %vm291_vm13 = vcmp.eq.f32.partialorder %v290_v44, 8.507059e+37  ;;  %v264_v4 = vsel %vm261_vm15, %v263_v60, %v259_v56  ;;  %v296_v21 = vmul.f32 %v249_v11, %v209_v10 }
 0x144   :  { %v269_v28 = vmul.f32 %v977_v17, %v268_v22  ;;  %v212_v6 = vadd.f32 %v211_v25, %v143_v2  ;;  %v301_v12 = vsub.f32 1.0, %v264_v4  ;;  %v528_v41 = vsel %vm57_vm0, %v49_v40, 0.0 }
 0x145   :  { %v527_v44 = vsel %vm57_vm0, %v48_v42, 0.0 }
 0x146   :  { %v270_v36 = vadd.f32 %v977_v17, %v269_v28  ;;  %v305_v25 = vmul.f32 %v301_v12, %v1177_v33  ;;  %v902_v33 = vld [vmem:[%s1455_s4 + $0x48] sm:$0xff]  ;;  %v905_v28 = vld [vmem:[%s1455_s4 + $0x60] sm:$0xff]  ;;  %v529_v47 = vadd.f32 %v528_v41, %v527_v44 }
 0x147   :  { %v979_v30 = vpop.eup %978 }
 0x148   :  { %v282_v34 = vmul.f32 %v979_v30, %v235_v18  ;;  %vm287_vm5 = vweird.f32 %v979_v30  ;;  %v274_v50 = vsel %vm1264_vm8, %v977_v17, %v270_v36  ;;  %v300_v17 = vsub.f32 1.0, %v249_v11  ;;  %v51_v36 = vld [vmem:[%s1452_s1 + $0x18] sm:$0xff] }
 0x149   :  { %vm288_vm11 = vmor %vm286_vm10, %vm287_vm5  ;;  %v279_v61 = vsel %vm276_vm12, %v278_v54, %v274_v50  ;;  %v297_v18 = vmul.f32 %v264_v4, %v212_v6  ;;  %584 = vmatpush.msrb.mxu3 %v51_v36  ;;  %v532_v49 = vsel %vm57_vm0, %v51_v36, 0.0 }
 0x14a   :  { %v283_v37 = vsub.f32 1.0, %v282_v34  ;;  %v302_v8 = vsub.f32 1.0, %v279_v61  ;;  %v304_v26 = vmul.f32 %v300_v17, %v1160_v24  ;;  %v903_v24 = vld [vmem:[%s1455_s4 + $0x50] sm:$0xff]  ;;  %v333_v34 = vpop.permute.xlu2 %332 }
 0x14b   :  { %v214_v38 = vpop.f32.mrf.mxu1  ;;  %v1304_v13 = vadd.f32 %v305_v25, %v297_v18  ;;  %v353_v18 = vpop.permute.xlu0 %352 }
 0x14c   :  { %v284_v43 = vmul.f32 %v979_v30, %v283_v37  ;;  %v215_v0 = vadd.f32 %v214_v38, %v148_v58  ;;  %v306_v20 = vmul.f32 %v302_v8, %v1158_v23  ;;  %v901_v23 = vld [vmem:[%s1455_s4 + $0x40] sm:$0xff]  ;;  %v50_v38 = vld [vmem:[%s1452_s1 + $0x10] sm:$0xff] }
 0x14d   :  { %585 = vmatpush.msrb.mxu3 %v50_v38 }
 0x14e   :  { %v285_v51 = vadd.f32 %v979_v30, %v284_v43  ;;  %v298_v15 = vmul.f32 %v279_v61, %v215_v0  ;;  %v530_v43 = vsel %vm57_vm0, %v50_v38, 0.0 }
 0x14f   :  { %586 = vmatpush.msrb.mxu3 %v49_v40  ;;  %v531_v50 = vadd.f32 %v530_v43, %v529_v47 }
 0x150   :  { %v289_v57 = vsel %vm288_vm11, %v979_v30, %v285_v51  ;;  %v1300_v22 = vadd.f32 %v306_v20, %v298_v15  ;;  %v906_v30 = vld [vmem:[%s1455_s4 + $0x68] sm:$0xff] }
 0x151   :  { %v294_v62 = vsel %vm291_vm13, %v293_v55, %v289_v57  ;;  %587 = vmatpush.msrb.mxu3 %v48_v42  ;;  %v1359_v54 = vadd.f32 %v532_v49, %v531_v50  ;;  %v343_v55 = vpop.permute.xlu1 %342 }
 0x152   :  { %v303_v1 = vsub.f32 1.0, %v294_v62  ;;  %v348_v0 = vpop.permute.xlu2 %347 }
 0x153   :  { %v217_v5 = vpop.f32.mrf.mxu1  ;;  %707 = vmatpush.msra.mxu3 %v51_v36 }
 0x154   :  { %v218_v9 = vadd.f32 %v217_v5, %v153_v31  ;;  %v307_v14 = vmul.f32 %v303_v1, %v1168_v29  ;;  %v1308_v29 = vadd.f32 %v304_v26, %v296_v21  ;;  %v907_v31 = vld [vmem:[%s1455_s4 + $0x70] sm:$0xff] }
 0x155   :  { %708 = vmatpush.msra.mxu3 %v50_v38 }
 0x156   :  { %v299_v16 = vmul.f32 %v294_v62, %v218_v9 }
 0x157   :  { %709 = vmatpush.msra.mxu3 %v49_v40 }
 0x158   :  { %v1296_v19 = vadd.f32 %v307_v14, %v299_v16 }
 0x159   :  { %710 = vmatpush.msra.mxu3 %v48_v42  ;;  %v358_v40 = vpop.permute.xlu1 %357 }
 0x15a   :  { %406 = vmatpush.msra.mxu2 %v1296_v19 }
 0x15c   :  { %407 = vmatpush.msra.mxu2 %v1300_v22 }
 0x15e   :  { %408 = vmatpush.msra.mxu2 %v1304_v13 }
 0x160   :  { %409 = vmatpush.msra.mxu2 %v1308_v29 }
 0x161   :  { %917 = vmatmul.msk.f32.vlgmr.msra.gmra.mxu2 %vm57_vm0, %v901_v23 }
 0x169   :  { %918 = vmatmul.msk.f32.gmra.mxu2 %vm57_vm0, %v902_v33 }
 0x171   :  { %919 = vmatmul.msk.f32.gmra.mxu2 %vm57_vm0, %v903_v24 }
 0x179   :  { %920 = vmatmul.msk.f32.gmra.mxu2 %vm57_vm0, %v904_v27 }
 0x181   :  { %921 = vmatmul.msk.f32.gmra.mxu2 %vm57_vm0, %v905_v28 }
 0x189   :  { %922 = vmatmul.msk.f32.gmra.mxu2 %vm57_vm0, %v906_v30 }
 0x191   :  { %923 = vmatmul.msk.f32.gmra.mxu2 %vm57_vm0, %v907_v31 }
 0x199   :  { %924 = vmatmul.msk.f32.gmra.mxu2 %vm57_vm0, %v908_v32 }
 0x1e4   :  { %v411_v35 = vpop.f32.mrf.mxu2 }
 0x1e5   :  { %v412_v37 = vadd.f32 %v411_v35, %v333_v34 }
 0x1e7   :  { %v925_v39 = vmul.f32 -1.442695, %v412_v37 }
 0x1e9   :  { %980 = vpow2.f32 %v925_v39 }
 0x1ec   :  { %v414_v46 = vpop.f32.mrf.mxu2 }
 0x1ed   :  { %v415_v48 = vadd.f32 %v414_v46, %v338_v45 }
 0x1ef   :  { %v981_v51 = vpop.eup %980  ;;  %v926_v52 = vmul.f32 -1.442695, %v415_v48 }
 0x1f0   :  { %v447_v53 = vadd.f32 1.0, %v981_v51 }
 0x1f1   :  { %982 = vpow2.f32 %v926_v52 }
 0x1f2   :  { %984 = vrcp.f32 %v447_v53  ;;  %v462_v2 = vand.u32 2147483648, %v447_v53  ;;  %v460_v5 = vand.u32 2147483647, %v447_v53  ;;  %vm456_vm3 = vweird.f32 %v447_v53 }
 0x1f4   :  { %v417_v56 = vpop.f32.mrf.mxu2  ;;  %v463_v11 = vor.u32 1.1754944e-38, %v462_v2  ;;  %vm461_vm5 = vcmp.eq.f32.partialorder %v460_v5, 8.507059e+37 }
 0x1f5   :  { %v418_v57 = vadd.f32 %v417_v56, %v343_v55 }
 0x1f7   :  { %v983_v58 = vpop.eup %982  ;;  %v927_v59 = vmul.f32 -1.442695, %v418_v57  ;;  %v363_v57 = vpop.permute.xlu2 %362 }
 0x1f8   :  { %v985_v60 = vpop.eup %984  ;;  %v448_v61 = vadd.f32 1.0, %v983_v58 }
 0x1f9   :  { %986 = vpow2.f32 %v927_v59  ;;  %v452_v62 = vmul.f32 %v985_v60, %v447_v53  ;;  %vm457_vm1 = vweird.f32 %v985_v60 }
 0x1fa   :  { %988 = vrcp.f32 %v448_v61  ;;  %vm458_vm4 = vmor %vm456_vm3, %vm457_vm1  ;;  %v477_v21 = vand.u32 2147483648, %v448_v61  ;;  %v475_v23 = vand.u32 2147483647, %v448_v61  ;;  %vm471_vm7 = vweird.f32 %v448_v61 }
 0x1fb   :  { %v453_v63 = vsub.f32 1.0, %v452_v62 }
 0x1fc   :  { %v420_v1 = vpop.f32.mrf.mxu2  ;;  %v478_v32 = vor.u32 1.1754944e-38, %v477_v21  ;;  %vm476_vm9 = vcmp.eq.f32.partialorder %v475_v23, 8.507059e+37  ;;  %v556_v21 = vld [vmem:[%s1457_s6] sm:$0xff]  ;;  %v534_v23 = vrot.slane %v1359_v54, 4 }
 0x1fd   :  { %v421_v3 = vadd.f32 %v420_v1, %v348_v0  ;;  %v454_v4 = vmul.f32 %v985_v60, %v453_v63 }
 0x1ff   :  { %v987_v7 = vpop.eup %986  ;;  %v928_v6 = vmul.f32 -1.442695, %v421_v3  ;;  %v455_v8 = vadd.f32 %v985_v60, %v454_v4 }
 0x200   :  { %v989_v9 = vpop.eup %988  ;;  %v449_v10 = vadd.f32 1.0, %v987_v7  ;;  %v368_v7 = vpop.permute.xlu0 %367 }
 0x201   :  { %990 = vpow2.f32 %v928_v6  ;;  %v459_v12 = vsel %vm458_vm4, %v985_v60, %v455_v8  ;;  %v467_v15 = vmul.f32 %v989_v9, %v448_v61  ;;  %vm472_vm6 = vweird.f32 %v989_v9 }
 0x202   :  { %992 = vrcp.f32 %v449_v10  ;;  %v464_v16 = vsel %vm461_vm5, %v463_v11, %v459_v12  ;;  %vm473_vm8 = vmor %vm471_vm7, %vm472_vm6  ;;  %v492_v41 = vand.u32 2147483648, %v449_v10  ;;  %v490_v44 = vand.u32 2147483647, %v449_v10 }
 0x203   :  { %v515_v14 = vsub.f32 1.0, %v464_v16  ;;  %v468_v17 = vsub.f32 1.0, %v467_v15  ;;  %vm486_vm11 = vweird.f32 %v449_v10  ;;  %vm810_vm7 = vcmask 523264  }
 0x204   :  { %v423_v20 = vpop.f32.mrf.mxu2  ;;  %v493_v49 = vor.u32 1.1754944e-38, %v492_v41  ;;  %vm491_vm13 = vcmp.eq.f32.partialorder %v490_v44, 8.507059e+37 }
 0x205   :  { %v424_v25 = vadd.f32 %v423_v20, %v353_v18  ;;  %v469_v26 = vmul.f32 %v989_v9, %v468_v17  ;;  %v519_v27 = vmul.f32 %v515_v14, %v1308_v29 }
 0x207   :  { %v991_v33 = vpop.eup %990  ;;  %v511_v24 = vmul.f32 %v464_v16, %v424_v25  ;;  %v470_v28 = vadd.f32 %v989_v9, %v469_v26  ;;  %v558_v25 = vld [vmem:[%s1457_s6 + $0x10] sm:$0xff]  ;;  %v559_v26 = vld [vmem:[%s1457_s6 + $0x18] sm:$0xff] }
 0x208   :  { %v993_v30 = vpop.eup %992  ;;  %v450_v31 = vadd.f32 1.0, %v991_v33  ;;  %v535_v33 = vadd.f32 %v534_v23, %v1359_v54  ;;  %v612_v54 = vpop.permute.xlu1 %611 }
 0x209   :  { %v1362_v34 = vadd.f32 %v519_v27, %v511_v24  ;;  %v474_v35 = vsel %vm473_vm8, %v989_v9, %v470_v28  ;;  %v482_v36 = vmul.f32 %v993_v30, %v449_v10  ;;  %vm487_vm10 = vweird.f32 %v993_v30 }
 0x20a   :  { %994 = vrcp.f32 %v450_v31  ;;  %v479_v37 = vsel %vm476_vm9, %v478_v32, %v474_v35  ;;  %vm488_vm12 = vmor %vm486_vm11, %vm487_vm10  ;;  %v507_v59 = vand.u32 2147483648, %v450_v31  ;;  %vm501_vm15 = vweird.f32 %v450_v31 }
 0x20b   :  { %929 = vmatmul.msk.f32.vlgmr.msrb.gmra.mxu3 %vm57_vm0, %v1362_v34  ;;  %v516_v38 = vsub.f32 1.0, %v479_v37  ;;  %v483_v39 = vsub.f32 1.0, %v482_v36  ;;  %v536_v24 = vrot.slane %v535_v33, 2 }
 0x20c   :  { %v426_v29 = vpop.f32.mrf.mxu2  ;;  %v508_v1 = vor.u32 1.1754944e-38, %v507_v59 }
 0x20d   :  { %v427_v42 = vadd.f32 %v426_v29, %v358_v40  ;;  %v484_v43 = vmul.f32 %v993_v30, %v483_v39  ;;  %v520_v46 = vmul.f32 %v516_v38, %v1304_v13  ;;  %v505_v13 = vand.u32 2147483647, %v450_v31 }
 0x20e   :  { %v537_v27 = vadd.f32 %v536_v24, %v535_v33 }
 0x20f   :  { %v512_v45 = vmul.f32 %v479_v37, %v427_v42  ;;  %v485_v47 = vadd.f32 %v993_v30, %v484_v43  ;;  %vm506_vm1 = vcmp.eq.f32.partialorder %v505_v13, 8.507059e+37 }
 0x210   :  { %v995_v48 = vpop.eup %994  ;;  %v538_v28 = vrot.slane %v537_v27, 1 }
 0x211   :  { %v524_v50 = vadd.f32 %v520_v46, %v512_v45  ;;  %v489_v51 = vsel %vm488_vm12, %v993_v30, %v485_v47  ;;  %v497_v52 = vmul.f32 %v995_v48, %v450_v31  ;;  %vm502_vm14 = vweird.f32 %v995_v48  ;;  %v617_v46 = vpop.permute.xlu2 %616 }
 0x212   :  { %v494_v53 = vsel %vm491_vm13, %v493_v49, %v489_v51  ;;  %vm503_vm2 = vmor %vm501_vm15, %vm502_vm14  ;;  %v539_v30 = vadd.f32 %v538_v28, %v537_v27  ;;  %v622_v51 = vpop.permute.xlu0 %621 }
 0x213   :  { %930 = vmatmul.msk.f32.gmra.mxu3 %vm57_vm0, %v524_v50  ;;  %v517_v55 = vsub.f32 1.0, %v494_v53  ;;  %v498_v56 = vsub.f32 1.0, %v497_v52 }
 0x214   :  { %v429_v58 = vpop.f32.mrf.mxu2  ;;  %v540_v31 = vadd.f32 1.0, %v539_v30 }
 0x215   :  { %v430_v60 = vadd.f32 %v429_v58, %v363_v57  ;;  %v499_v61 = vmul.f32 %v995_v48, %v498_v56  ;;  %v521_v63 = vmul.f32 %v517_v55, %v1300_v22  ;;  %v627_v57 = vpop.permute.xlu1 %626 }
 0x216   :  { %996 = vrcp.f32 %v540_v31  ;;  %vm546_vm3 = vweird.f32 %v540_v31  ;;  %v552_v37 = vand.u32 2147483648, %v540_v31  ;;  %v550_v39 = vand.u32 2147483647, %v540_v31 }
 0x217   :  { %v513_v62 = vmul.f32 %v494_v53, %v430_v60  ;;  %v500_v0 = vadd.f32 %v995_v48, %v499_v61 }
 0x218   :  { %v553_v40 = vor.u32 1.1754944e-38, %v552_v37  ;;  %vm551_vm6 = vcmp.eq.f32.partialorder %v550_v39, 8.507059e+37 }
 0x219   :  { %v525_v2 = vadd.f32 %v521_v63, %v513_v62  ;;  %v504_v3 = vsel %vm503_vm2, %v995_v48, %v500_v0 }
 0x21a   :  { %v509_v4 = vsel %vm506_vm1, %v508_v1, %v504_v3 }
 0x21b   :  { %931 = vmatmul.msk.f32.gmra.mxu3 %vm57_vm0, %v525_v2  ;;  %v518_v5 = vsub.f32 1.0, %v509_v4 }
 0x21c   :  { %v432_v6 = vpop.f32.mrf.mxu2  ;;  %v997_v32 = vpop.eup %996 }
 0x21d   :  { %v433_v8 = vadd.f32 %v432_v6, %v368_v7  ;;  %v522_v10 = vmul.f32 %v518_v5, %v1296_v19  ;;  %v557_v19 = vld [vmem:[%s1457_s6 + $0x8] sm:$0xff]  ;;  %vm547_vm4 = vweird.f32 %v997_v32  ;;  %v937_v5 = vld [vmem:[%s1457_s6 + $0x20] sm:$0xff]  ;;  %v939_v6 = vld [vmem:[%s1457_s6 + $0x30] sm:$0xff] }
 0x21e   :  { %vm548_vm5 = vmor %vm546_vm3, %vm547_vm4  ;;  %v938_v7 = vld [vmem:[%s1457_s6 + $0x28] sm:$0xff] }
 0x21f   :  { %v514_v9 = vmul.f32 %v509_v4, %v433_v8  ;;  %v940_v8 = vld [vmem:[%s1457_s6 + $0x38] sm:$0xff] }
 0x221   :  { %v526_v11 = vadd.f32 %v522_v10, %v514_v9 }
 0x223   :  { %932 = vmatmul.msk.f32.gmra.mxu3 %vm57_vm0, %v526_v11 }
 0x28e   :  { %v589_v22 = vpop.f32.mrf.mxu3 }
 0x28f   :  { %v590_v20 = vadd.f32 %v589_v22, %v1362_v34  ;;  %v542_v34 = vmul.f32 %v997_v32, %v540_v31  ;;  %v751_v22 = vpop.permute.xlu2 %750  ;;  %v802_v31 = vld [vmem:[%s1459_s8] sm:$0x1] }
 0x291   :  { %v543_v35 = vsub.f32 1.0, %v542_v34  ;;  %v836_v34 = vld [vmem:[%s1461_s10 + $0x8] sm:$0xff] }
 0x293   :  { %v544_v36 = vmul.f32 %v997_v32, %v543_v35  ;;  %v835_v35 = vld [vmem:[%s1461_s10] sm:$0xff] }
 0x295   :  { %v545_v38 = vadd.f32 %v997_v32, %v544_v36 }
 0x296   :  { %v592_v12 = vpop.f32.mrf.mxu3 }
 0x297   :  { %v593_v18 = vadd.f32 %v592_v12, %v524_v50  ;;  %v549_v29 = vsel %vm548_vm5, %v997_v32, %v545_v38  ;;  %v837_v32 = vld [vmem:[%s1461_s10 + $0x10] sm:$0xff] }
 0x298   :  { %v1391_v41 = vsel %vm551_vm6, %v553_v40, %v549_v29  ;;  %v52_v29 = vld [vmem:[%s1453_s2] sm:$0x1] }
 0x29e   :  { %v595_v15 = vpop.f32.mrf.mxu3 }
 0x29f   :  { %v596_v17 = vadd.f32 %v595_v15, %v525_v2  ;;  %v746_v15 = vpop.permute.xlu0 %745 }
 0x2a6   :  { %v598_v16 = vpop.f32.mrf.mxu3 }
 0x2a7   :  { %v599_v14 = vadd.f32 %v598_v16, %v526_v11  ;;  %v838_v11 = vld [vmem:[%s1461_s10 + $0x18] sm:$0xff]  ;;  %v807_v36 = vpop.permute.xlu0 %806  ;;  %s1025_s10 = smov [#allocation3]  }
 0x2a8   :  { %855 = vmatpush.msrb.mxu2 %v838_v11  ;;  %v809_v37 = vperm.slane %v807_v36, 0  ;;  %s874_s20 = sshll.u32 %s1025_s10, 4  ;;  %s875_s20 = int_to_ptr.vmem [resolvable:$true] %s874_s20 }
 0x2a9   :  { %653 = vmatpush.msrb.mxu0 %v599_v14  ;;  %v741_v14 = vpop.permute.xlu1 %740 }
 0x2aa   :  { %856 = vmatpush.msrb.mxu2 %v837_v32 }
 0x2ab   :  { %654 = vmatpush.msrb.mxu0 %v596_v17 }
 0x2ac   :  { %857 = vmatpush.msrb.mxu2 %v836_v34 }
 0x2ad   :  { %655 = vmatpush.msrb.mxu0 %v593_v18 }
 0x2ae   :  { %858 = vmatpush.msrb.mxu2 %v835_v35 }
 0x2af   :  { %656 = vmatpush.msrb.mxu0 %v590_v20 }
 0x2b0   :  { %933 = vmatmul.msk.f32.vlgmr.msrb.gmra.mxu0 %vm57_vm0, %v556_v21  ;;  %v736_v21 = vpop.permute.xlu2 %735 }
 0x2b8   :  { %934 = vmatmul.msk.f32.gmra.mxu0 %vm57_vm0, %v557_v19 }
 0x2c0   :  { %935 = vmatmul.msk.f32.gmra.mxu0 %vm57_vm0, %v558_v25 }
 0x2c8   :  { %936 = vmatmul.msk.f32.gmra.mxu0 %vm57_vm0, %v559_v26 }
 0x32d   :  { %v658_v42 = vpop.f32.mrf.mxu0 }
 0x32e   :  { %v659_v43 = vadd.f32 %v658_v42, %v612_v54  ;;  %v864_v54 = vsub.f32 1.0, %v52_v29 }
 0x330   :  { %v670_v44 = vmul.f32 %v659_v43, %v1391_v41 }
 0x332   :  { %v1394_v45 = vmax.f32 %v670_v44, 0.0  ;;  %v865_v44 = vmul.f32 -1e+30, %v864_v54 }
 0x334   :  { %941 = vmatmul.msk.f32.vlgmr.msra.gmra.mxu3 %vm57_vm0, %v1394_v45 }
 0x335   :  { %v661_v47 = vpop.f32.mrf.mxu0 }
 0x336   :  { %v662_v48 = vadd.f32 %v661_v47, %v617_v46 }
 0x338   :  { %v671_v49 = vmul.f32 %v662_v48, %v1391_v41 }
 0x33a   :  { %v675_v50 = vmax.f32 %v671_v49, 0.0 }
 0x33c   :  { %942 = vmatmul.msk.f32.gmra.mxu3 %vm57_vm0, %v675_v50 }
 0x33d   :  { %v664_v52 = vpop.f32.mrf.mxu0 }
 0x33e   :  { %v665_v53 = vadd.f32 %v664_v52, %v622_v51 }
 0x340   :  { %v672_v55 = vmul.f32 %v665_v53, %v1391_v41 }
 0x342   :  { %v676_v56 = vmax.f32 %v672_v55, 0.0 }
 0x344   :  { %943 = vmatmul.msk.f32.gmra.mxu3 %vm57_vm0, %v676_v56 }
 0x345   :  { %v667_v58 = vpop.f32.mrf.mxu0 }
 0x346   :  { %v668_v59 = vadd.f32 %v667_v58, %v627_v57 }
 0x348   :  { %v673_v60 = vmul.f32 %v668_v59, %v1391_v41 }
 0x34a   :  { %v677_v61 = vmax.f32 %v673_v60, 0.0 }
 0x34c   :  { %944 = vmatmul.msk.f32.gmra.mxu3 %vm57_vm0, %v677_v61 }
 0x3b7   :  { %v712_v13 = vpop.f32.mrf.mxu3 }
 0x3b8   :  { %v713_v4 = vadd.f32 %v712_v13, %v1394_v45 }
 0x3bf   :  { %v715_v62 = vpop.f32.mrf.mxu3 }
 0x3c0   :  { %v716_v3 = vadd.f32 %v715_v62, %v675_v50 }
 0x3c7   :  { %v718_v63 = vpop.f32.mrf.mxu3 }
 0x3c8   :  { %v719_v2 = vadd.f32 %v718_v63, %v676_v56 }
 0x3cf   :  { %v721_v0 = vpop.f32.mrf.mxu3 }
 0x3d0   :  { %v722_v1 = vadd.f32 %v721_v0, %v677_v61 }
 0x3d2   :  { %777 = vmatpush.msra.mxu0 %v722_v1 }
 0x3d4   :  { %778 = vmatpush.msra.mxu0 %v719_v2 }
 0x3d6   :  { %779 = vmatpush.msra.mxu0 %v716_v3 }
 0x3d8   :  { %780 = vmatpush.msra.mxu0 %v713_v4 }
 0x3d9   :  { %949 = vmatmul.msk.f32.vlgmr.msra.gmra.mxu0 %vm57_vm0, %v937_v5 }
 0x3e1   :  { %950 = vmatmul.msk.f32.gmra.mxu0 %vm57_vm0, %v938_v7 }
 0x3e9   :  { %951 = vmatmul.msk.f32.gmra.mxu0 %vm57_vm0, %v939_v6 }
 0x3f1   :  { %952 = vmatmul.msk.f32.gmra.mxu0 %vm57_vm0, %v940_v8 }
 0x456   :  { %v782_v9 = vpop.f32.mrf.mxu0 }
 0x457   :  { %v783_v19 = vadd.f32 %v782_v9, %v736_v21 }
 0x459   :  { %v794_v27 = vmul.f32 %v783_v19, %v1391_v41 }
 0x45b   :  { %v798_v30 = vmax.f32 %v794_v27, 0.0 }
 0x45e   :  { %v785_v10 = vpop.f32.mrf.mxu0 }
 0x45f   :  { %v786_v18 = vadd.f32 %v785_v10, %v741_v14 }
 0x461   :  { %v795_v33 = vmul.f32 %v786_v18, %v1391_v41 }
 0x463   :  { %v799_v28 = vmax.f32 %v795_v33, 0.0 }
 0x466   :  { %v788_v12 = vpop.f32.mrf.mxu0 }
 0x467   :  { %v789_v16 = vadd.f32 %v788_v12, %v746_v15 }
 0x469   :  { %v796_v26 = vmul.f32 %v789_v16, %v1391_v41 }
 0x46b   :  { %v800_v24 = vmax.f32 %v796_v26, 0.0 }
 0x46e   :  { %v791_v17 = vpop.f32.mrf.mxu0 }
 0x46f   :  { %v792_v20 = vadd.f32 %v791_v17, %v751_v22 }
 0x471   :  { %v797_v25 = vmul.f32 %v792_v20, %v1391_v41  ;;  %v839_v41 = vld [vmem:[%s1462_s11] sm:$0x1] }
 0x473   :  { %v801_v23 = vmax.f32 %v797_v25, 0.0 }
 0x475   :  { %822 = vmatpush.msrb.mxu1 %v801_v23 }
 0x477   :  { %823 = vmatpush.msrb.mxu1 %v800_v24 }
 0x479   :  { %824 = vmatpush.msrb.mxu1 %v799_v28 }
 0x47b   :  { %825 = vmatpush.msrb.mxu1 %v798_v30 }
 0x47d   :  { %826 = vmatpush.msrb.mxu1 %v677_v61 }
 0x47f   :  { %827 = vmatpush.msrb.mxu1 %v676_v56 }
 0x481   :  { %828 = vmatpush.msrb.mxu1 %v675_v50 }
 0x483   :  { %829 = vmatpush.msrb.mxu1 %v1394_v45 }
 0x484   :  { %953 = vmatmul.msk.f32.vlgmr.msrb.gmra.mxu1 %vm810_vm7, %v802_v31 }
 0x501   :  { %v831_v38 = vpop.f32.mrf.mxu1 }
 0x502   :  { %v832_v39 = vadd.f32 %v831_v38, %v809_v37 }
 0x504   :  { %v834_v40 = vmax.f32 %v832_v39, 0.0 }
 0x506   :  { %954 = vmatmul.msk.f32.vlgmr.msrb.gmra.mxu2 %vm57_vm0, %v834_v40  ;;  %vm867_vm0 = vcmask 253952  }
 0x589   :  { %v860_v42 = vpop.f32.mrf.mxu2 }
 0x58a   :  { %v861_v43 = vadd.f32 %v860_v42, %v839_v41 }
 0x58c   :  { %v863_v45 = vmul.f32 %v861_v43, %v52_v29 }
 0x58e   :  { %v866_v46 = vadd.f32 %v865_v44, %v863_v45 }
 0x590   :  { %868 = vst.msk [vmem:[#allocation3] sm:$0x1] %vm867_vm0, %v866_v46 }
 0x591   :  { %879 = dma.vmem_to_hbm [thread:$0]  %s875_s20, 16, %s877_s23, [#allocation4]  }
 0x592   :  { %1022 = dma.done.wait [#allocation4], 16  }
 0x593   :  { %1023 = vsyncadd [#allocation4], 4294967280 }
 0x594   :  { %884 = vsyncpa [#allocation4], 1 }

</bundles_post_ra>
